<compile_context>
chip_gen: v6e
topology: v6e:2x2x1
jax: 0.10.0
libtpu: 0.0.40
codegen_flags: <defaults>
</compile_context>

<pallas_src>
import jax
import jax.numpy as jnp
from jax import lax
from jax.experimental import pallas as pl
from jax.experimental.pallas import tpu as pltpu


def causal_attn_kernel(x_ref, wqkv_ref, o_ref):
    # x_ref:    (B, T, d_in)      whole batch in one block
    # wqkv_ref: (d_in, 3*d_out)   fused [Wq * 1/sqrt(d_k) | Wk | Wv]
    # o_ref:    (B, T, d_out)
    w_qkv = wqkv_ref[...]
    d_out = w_qkv.shape[1] // 3
    B = x_ref.shape[0]
    T = x_ref.shape[1]

    # Causal mask (torch.triu(..., diagonal=1) -> -inf), shared across batch.
    row = lax.broadcasted_iota(jnp.int32, (T, T), 0)
    col = lax.broadcasted_iota(jnp.int32, (T, T), 1)
    causal = col > row

    for b in range(B):  # B is tiny & static -> unrolled inside one grid step
        xb = x_ref[b]                                           # (T, d_in)

        # Fused Q/K/V projection: one MXU pass instead of three.
        # The 1/sqrt(d_k) softmax scale is pre-folded into the Q columns.
        qkv = jnp.dot(xb, w_qkv, preferred_element_type=jnp.float32)  # (T, 3*d_out)
        q = qkv[:, :d_out]
        k = qkv[:, d_out:2 * d_out]
        v = qkv[:, 2 * d_out:]

        # scores[t, s] = q[t] . k[s] -- contract feature dims directly,
        # no explicit transpose of k.
        scores = lax.dot_general(
            q, k,
            dimension_numbers=(((1,), (1,)), ((), ())),
            preferred_element_type=jnp.float32)                 # (T, T)
        scores = jnp.where(causal, -jnp.inf, scores)

        # Numerically stable softmax; approximate reciprocal runs on the EUP
        # slot instead of burning VALU cycles.
        m = jnp.max(scores, axis=-1, keepdims=True)
        e = jnp.exp(scores - m)
        attn = e * pl.reciprocal(jnp.sum(e, axis=-1, keepdims=True), approx=True)

        # Dropout = identity (eval-mode semantics).
        ctx = jnp.dot(attn, v, preferred_element_type=jnp.float32)    # (T, d_out)
        o_ref[b] = ctx.astype(o_ref.dtype)


def causal_attention(x, wq, wk, wv):
    """x: (B, T, d_in); wq/wk/wv: (d_in, d_out). Returns (B, T, d_out)."""
    B, T, d_in = x.shape
    d_out = wq.shape[1]

    # Fold the 1/sqrt(d_k) scale into the query projection and fuse the three
    # projection matrices into a single (d_in, 3*d_out) operand.
    scale = 1.0 / jnp.sqrt(jnp.float32(d_out))
    w_qkv = jnp.concatenate([wq * scale, wk, wv], axis=1)

    return pl.pallas_call(
        causal_attn_kernel,
        out_shape=jax.ShapeDtypeStruct((B, T, d_out), x.dtype),
        grid=(1,),  # single step: whole batch per invocation (no per-row grid overhead)
        in_specs=[
            pl.BlockSpec((B, T, d_in), lambda i: (0, 0, 0)),
            pl.BlockSpec((d_in, 3 * d_out), lambda i: (0, 0)),
        ],
        out_specs=pl.BlockSpec((B, T, d_out), lambda i: (0, 0, 0)),
        compiler_params=pltpu.CompilerParams(
            dimension_semantics=("arbitrary",)),
    )(x, w_qkv)


def reference_attention(x, wq, wk, wv):
    """Pure-JAX reference mirroring the PyTorch forward (eval-mode dropout)."""
    q = x @ wq
    k = x @ wk
    v = x @ wv
    scores = jnp.einsum("btd,bsd->bts", q, k)
    T = x.shape[1]
    mask = jnp.triu(jnp.ones((T, T), dtype=bool), k=1)
    scores = jnp.where(mask[None], -jnp.inf, scores)
    w = jax.nn.softmax(scores / jnp.sqrt(jnp.float32(k.shape[-1])), axis=-1)
    return jnp.einsum("bts,bsd->btd", w, v)


if __name__ == "__main__":
    # Inputs copied from the PyTorch script.
    inputs = jnp.array(
        [[0.43, 0.15, 0.89],
         [0.55, 0.87, 0.66],
         [0.57, 0.85, 0.64],
         [0.22, 0.58, 0.33],
         [0.77, 0.25, 0.10],
         [0.05, 0.80, 0.55]], dtype=jnp.float32)
    x = jnp.stack([inputs, inputs], axis=0)          # (B=2, T=6, d_in=3)

    d_in = x.shape[-1]
    d_out = 2

    # Deterministic parameter init (nn.Linear-style uniform(-1/sqrt(d_in), 1/sqrt(d_in))).
    key = jax.random.PRNGKey(0)
    kq, kk, kv = jax.random.split(key, 3)
    bound = 1.0 / jnp.sqrt(jnp.float32(d_in))
    # PyTorch weights are (d_out, d_in); we store them pre-transposed as (d_in, d_out).
    wq = jax.random.uniform(kq, (d_in, d_out), jnp.float32, -bound, bound)
    wk = jax.random.uniform(kk, (d_in, d_out), jnp.float32, -bound, bound)
    wv = jax.random.uniform(kv, (d_in, d_out), jnp.float32, -bound, bound)

    out = causal_attention(x, wq, wk, wv)
    out = jax.block_until_ready(out)

    ref = reference_attention(x, wq, wk, wv)
    assert out.shape == (2, 6, d_out)
    # Tolerance loosened slightly because the softmax denominator uses the
    # EUP approximate reciprocal (pl.reciprocal(..., approx=True)).
    assert jnp.allclose(out, ref, atol=1e-2, rtol=1e-2), (out, ref)

    print("KERNEL_OK")
</pallas_src>

<mosaic_0001>
module attributes {stable_mosaic.version = 11 : i64} {
  func.func @causal_attn_kernel(%arg0: i32, %arg1: memref<2x6x3xf32, #tpu.memory_space<vmem>>, %arg2: memref<3x6xf32, #tpu.memory_space<vmem>>, %arg3: memref<2x6x2xf32, #tpu.memory_space<vmem>>) attributes {dimension_semantics = [#tpu.dimension_semantics<arbitrary>], iteration_bounds = array<i64: 1>, scalar_prefetch = 0 : i64, scratch_operands = 0 : i64, tpu.core_type = #tpu.core_type<tc>, window_params = [{pipeline_mode = #tpu.pipeline_mode<synchronous>, transform_indices = @transform_0, window_bounds = array<i64: 2, 6, 3>}, {pipeline_mode = #tpu.pipeline_mode<synchronous>, transform_indices = @transform_1, window_bounds = array<i64: 3, 6>}, {pipeline_mode = #tpu.pipeline_mode<synchronous>, transform_indices = @transform_2, window_bounds = array<i64: 2, 6, 2>}]} {
    %c0 = arith.constant 0 : index
    %c0_0 = arith.constant 0 : index
    %0 = vector.load %arg2[%c0, %c0_0] : memref<3x6xf32, #tpu.memory_space<vmem>>, vector<3x6xf32>
    %1 = tpu.iota {dimensions = array<i32: 0>} : vector<6x6xi32>
    %2 = tpu.iota {dimensions = array<i32: 1>} : vector<6x6xi32>
    %3 = arith.cmpi sgt, %2, %1 : vector<6x6xi32>
    %c0_1 = arith.constant 0 : index
    %c0_2 = arith.constant 0 : index
    %c0_3 = arith.constant 0 : index
    %4 = vector.load %arg1[%c0_1, %c0_2, %c0_3] : memref<2x6x3xf32, #tpu.memory_space<vmem>>, vector<1x6x3xf32>
    %5 = vector.shape_cast %4 : vector<1x6x3xf32> to vector<6x3xf32>
    %cst = arith.constant dense<0.000000e+00> : vector<6x6xf32>
    %6 = tpu.matmul %5, %0, %cst {dimension_numbers = #tpu.dot_dimension_numbers<[1], [0], [0], [1], [0, 0, 1, 1], [], []>} : vector<6x3xf32>, vector<3x6xf32>, vector<6x6xf32> -> vector<6x6xf32>
    %7 = vector.extract_strided_slice %6 {offsets = [0, 0], sizes = [6, 2], strides = [1, 1]} : vector<6x6xf32> to vector<6x2xf32>
    %8 = vector.extract_strided_slice %6 {offsets = [0, 2], sizes = [6, 2], strides = [1, 1]} : vector<6x6xf32> to vector<6x2xf32>
    %9 = vector.extract_strided_slice %6 {offsets = [0, 4], sizes = [6, 2], strides = [1, 1]} : vector<6x6xf32> to vector<6x2xf32>
    %cst_4 = arith.constant dense<0.000000e+00> : vector<6x6xf32>
    %10 = tpu.matmul %7, %8, %cst_4 {dimension_numbers = #tpu.dot_dimension_numbers<[1], [1], [0], [0], [0, 0, 1, 0], [], []>} : vector<6x2xf32>, vector<6x2xf32>, vector<6x6xf32> -> vector<6x6xf32>
    %cst_5 = arith.constant 0xFF800000 : f32
    %11 = vector.broadcast %cst_5 : f32 to vector<6x6xf32>
    %12 = arith.select %3, %11, %10 : vector<6x6xi1>, vector<6x6xf32>
    %cst_6 = arith.constant dense<0xFF800000> : vector<6xf32>
    %13 = vector.multi_reduction <maximumf>, %12, %cst_6 [1] : vector<6x6xf32> to vector<6xf32>
    %14 = vector.shape_cast %13 : vector<6xf32> to vector<6x1xf32>
    %15 = vector.broadcast %14 : vector<6x1xf32> to vector<6x6xf32>
    %16 = arith.subf %12, %15 : vector<6x6xf32>
    %17 = math.exp %16 : vector<6x6xf32>
    %cst_7 = arith.constant dense<0.000000e+00> : vector<6xf32>
    %18 = vector.multi_reduction <add>, %17, %cst_7 [1] : vector<6x6xf32> to vector<6xf32>
    %19 = vector.shape_cast %18 : vector<6xf32> to vector<6x1xf32>
    %20 = tpu.reciprocal %19 {approx = true} : vector<6x1xf32> -> vector<6x1xf32>
    %21 = vector.broadcast %20 : vector<6x1xf32> to vector<6x6xf32>
    %22 = arith.mulf %17, %21 : vector<6x6xf32>
    %cst_8 = arith.constant dense<0.000000e+00> : vector<6x2xf32>
    %23 = tpu.matmul %22, %9, %cst_8 {dimension_numbers = #tpu.dot_dimension_numbers<[1], [0], [0], [1], [0, 0, 1, 1], [], []>} : vector<6x6xf32>, vector<6x2xf32>, vector<6x2xf32> -> vector<6x2xf32>
    %c0_9 = arith.constant 0 : index
    %c0_10 = arith.constant 0 : index
    %c0_11 = arith.constant 0 : index
    %24 = vector.load %arg3[%c0_9, %c0_10, %c0_11] : memref<2x6x2xf32, #tpu.memory_space<vmem>>, vector<1x6x2xf32>
    %25 = vector.shape_cast %24 : vector<1x6x2xf32> to vector<6x2xf32>
    %26 = vector.shape_cast %23 : vector<6x2xf32> to vector<1x6x2xf32>
    tpu.vector_store %arg3[%c0_9, %c0_10, %c0_11], %26 {strides = array<i32>} : memref<2x6x2xf32, #tpu.memory_space<vmem>>, vector<1x6x2xf32>,
    %c1 = arith.constant 1 : index
    %c0_12 = arith.constant 0 : index
    %c0_13 = arith.constant 0 : index
    %27 = vector.load %arg1[%c1, %c0_12, %c0_13] : memref<2x6x3xf32, #tpu.memory_space<vmem>>, vector<1x6x3xf32>
    %28 = vector.shape_cast %27 : vector<1x6x3xf32> to vector<6x3xf32>
    %cst_14 = arith.constant dense<0.000000e+00> : vector<6x6xf32>
    %29 = tpu.matmul %28, %0, %cst_14 {dimension_numbers = #tpu.dot_dimension_numbers<[1], [0], [0], [1], [0, 0, 1, 1], [], []>} : vector<6x3xf32>, vector<3x6xf32>, vector<6x6xf32> -> vector<6x6xf32>
    %30 = vector.extract_strided_slice %29 {offsets = [0, 0], sizes = [6, 2], strides = [1, 1]} : vector<6x6xf32> to vector<6x2xf32>
    %31 = vector.extract_strided_slice %29 {offsets = [0, 2], sizes = [6, 2], strides = [1, 1]} : vector<6x6xf32> to vector<6x2xf32>
    %32 = vector.extract_strided_slice %29 {offsets = [0, 4], sizes = [6, 2], strides = [1, 1]} : vector<6x6xf32> to vector<6x2xf32>
    %cst_15 = arith.constant dense<0.000000e+00> : vector<6x6xf32>
    %33 = tpu.matmul %30, %31, %cst_15 {dimension_numbers = #tpu.dot_dimension_numbers<[1], [1], [0], [0], [0, 0, 1, 0], [], []>} : vector<6x2xf32>, vector<6x2xf32>, vector<6x6xf32> -> vector<6x6xf32>
    %cst_16 = arith.constant 0xFF800000 : f32
    %34 = vector.broadcast %cst_16 : f32 to vector<6x6xf32>
    %35 = arith.select %3, %34, %33 : vector<6x6xi1>, vector<6x6xf32>
    %cst_17 = arith.constant dense<0xFF800000> : vector<6xf32>
    %36 = vector.multi_reduction <maximumf>, %35, %cst_17 [1] : vector<6x6xf32> to vector<6xf32>
    %37 = vector.shape_cast %36 : vector<6xf32> to vector<6x1xf32>
    %38 = vector.broadcast %37 : vector<6x1xf32> to vector<6x6xf32>
    %39 = arith.subf %35, %38 : vector<6x6xf32>
    %40 = math.exp %39 : vector<6x6xf32>
    %cst_18 = arith.constant dense<0.000000e+00> : vector<6xf32>
    %41 = vector.multi_reduction <add>, %40, %cst_18 [1] : vector<6x6xf32> to vector<6xf32>
    %42 = vector.shape_cast %41 : vector<6xf32> to vector<6x1xf32>
    %43 = tpu.reciprocal %42 {approx = true} : vector<6x1xf32> -> vector<6x1xf32>
    %44 = vector.broadcast %43 : vector<6x1xf32> to vector<6x6xf32>
    %45 = arith.mulf %40, %44 : vector<6x6xf32>
    %cst_19 = arith.constant dense<0.000000e+00> : vector<6x2xf32>
    %46 = tpu.matmul %45, %32, %cst_19 {dimension_numbers = #tpu.dot_dimension_numbers<[1], [0], [0], [1], [0, 0, 1, 1], [], []>} : vector<6x6xf32>, vector<6x2xf32>, vector<6x2xf32> -> vector<6x2xf32>
    %c1_20 = arith.constant 1 : index
    %c0_21 = arith.constant 0 : index
    %c0_22 = arith.constant 0 : index
    %47 = vector.load %arg3[%c1_20, %c0_21, %c0_22] : memref<2x6x2xf32, #tpu.memory_space<vmem>>, vector<1x6x2xf32>
    %48 = vector.shape_cast %47 : vector<1x6x2xf32> to vector<6x2xf32>
    %49 = vector.shape_cast %46 : vector<6x2xf32> to vector<1x6x2xf32>
    tpu.vector_store %arg3[%c1_20, %c0_21, %c0_22], %49 {strides = array<i32>} : memref<2x6x2xf32, #tpu.memory_space<vmem>>, vector<1x6x2xf32>,
    return
  }
  func.func @transform_0(%arg0: i32) -> (i32, i32, i32) {
    %c0_i32 = arith.constant 0 : i32
    %c0_i32_0 = arith.constant 0 : i32
    %c0_i32_1 = arith.constant 0 : i32
    %c0_i32_2 = arith.constant 0 : i32
    return %c0_i32, %c0_i32_0, %c0_i32_1 : i32, i32, i32
  }
  func.func @transform_1(%arg0: i32) -> (i32, i32) {
    %c0_i32 = arith.constant 0 : i32
    %c0_i32_0 = arith.constant 0 : i32
    %c0_i32_1 = arith.constant 0 : i32
    return %c0_i32, %c0_i32_0 : i32, i32
  }
  func.func @transform_2(%arg0: i32) -> (i32, i32, i32) {
    %c0_i32 = arith.constant 0 : i32
    %c0_i32_0 = arith.constant 0 : i32
    %c0_i32_1 = arith.constant 0 : i32
    %c0_i32_2 = arith.constant 0 : i32
    return %c0_i32, %c0_i32_0, %c0_i32_1 : i32, i32, i32
  }
}

</mosaic_0001>

<bundles_post_ra>
// kernel: tpu_custom_call.1
= control target key start
LH: loop header
LB: loop body
LE: loop exit
PB: predicated region body
PF: predicated region fallthrough
CT: control target
= control target key end

     0   :  { %vm22_vm0 = vcmask 1042432   ;;  %vm18_vm1 = vcmask 23552   ;;  %v583_v0 = vmov 0.0   ;;  %vm584_vm2 = vmmov 0   ;;  %s585_s13 = smov 124   ;;  %s647_s1 = inlined_call_operand.vmem [shape: f32[3,6], index: 1, kind: input, shape index: {}]   ;;  %s648_s0 = inlined_call_operand.vmem [shape: f32[2,6,3], index: 0, kind: input, shape index: {}]   ;;  %s649_s2 = inlined_call_operand.vmem [shape: f32[2,6,2], index: 2, kind: output, shape index: {}]  }
   0x1   :  { %541 = vmatprep.subr.mxu0 %v583_v0  ;;  %v11_v1 = vld [vmem:[%s647_s1] sm:$0x7]  ;;  %543 = vmatprep.mubr.msk.f32.mxu0 %vm584_vm2, %v583_v0  ;;  %s586_s1 = smov 126   ;;  %vm99_vm3 = vcmask 15360   ;;  %vm193_vm4 = vcmask 1045504   ;;  %v12_v8 = vlaneseq  ;;  %vm175_vm6 = vcmask 46080  }
   0x2   :  { %v17_v2 = vld [vmem:[%s648_s0] sm:$0x3f]  ;;  %542 = vmatpush3.msk.msra.mxu0 %vm22_vm0, %v11_v1  ;;  %546 = vmatprep.subr.mxu1 %v583_v0  ;;  %v521_v7 = vld [vmem:[%s648_s0 + $0x8] sm:$0x3f]  ;;  %vm189_vm7 = vcmask 48128   ;;  %vm266_vm8 = vcmask 13312  }
   0x3   :  { %544 = vmatmul.mubr.msk.f32.vlgmr.msra.gmra.mxu0 %vm18_vm1, %v17_v2  ;;  %551 = vmatprep.subr.mxu0 %v583_v0  ;;  %v13_v9 = vshrl.u32 %v12_v8, 7  ;;  %v15_v10 = vand.u32 127, %v12_v8 }
   0x4   :  { %548 = vmatprep.mubr.msk.f32.mxu1 %vm584_vm2, %v583_v0  ;;  %553 = vmatprep.mubr.msk.f32.mxu0 %vm584_vm2, %v583_v0 }
   0x5   :  { %vm16_vm5 = vcmp.gt.s32.totalorder %v15_v10, %v13_v9 }
  0xc3   :  { %v92_v3 = vpop.f32.mrf.mxu0 }
  0xc4   :  { %187 = vrot.lane.b32.xlu1 %v92_v3, %s585_s13  ;;  %97 = vrot.lane.b32.xlu0 %v92_v3, %s586_s1 }
  0xc5   :  { %v545_v4 = vpop.f32.mrf.mxu0 }
 0x136   :  { %v188_v5 = vpop.permute.xlu1 %187  ;;  %v98_v6 = vpop.permute.xlu0 %97 }
 0x137   :  { %547 = vmatpush3.xpose.msk.msra.mxu1 %vm99_vm3, %v98_v6  ;;  %552 = vmatpush3.msk.msra.mxu0 %vm193_vm4, %v188_v5 }
 0x138   :  { %556 = vmatprep.subr.mxu1 %v583_v0  ;;  %561 = vmatprep.subr.mxu0 %v583_v0 }
 0x13a   :  { %549 = vmatmul.mubr.msk.f32.vlgmr.msra.gmra.mxu1 %vm99_vm3, %v92_v3 }
 0x13b   :  { %557 = vmatpush3.msk.msra.mxu1 %vm22_vm0, %v11_v1  ;;  %558 = vmatprep.mubr.msk.f32.mxu1 %vm584_vm2, %v583_v0 }
 0x13c   :  { %566 = vmatprep.subr.mxu1 %v583_v0 }
 0x13e   :  { %559 = vmatmul.mubr.msk.f32.vlgmr.msra.gmra.mxu1 %vm18_vm1, %v521_v7 }
 0x13f   :  { %568 = vmatprep.mubr.msk.f32.mxu1 %vm584_vm2, %v583_v0 }
 0x1fa   :  { %v170_v11 = vpop.f32.mrf.mxu1 }
 0x1fb   :  { %v174_v12 = vsel %vm16_vm5, -inf, %v170_v11 }
 0x1fc   :  { %v550_v13 = vpop.f32.mrf.mxu1  ;;  %v176_v14 = vsel %vm175_vm6, %v174_v12, -inf }
 0x1fd   :  { %177 = vmax.xlane.f32.xlu0 %v176_v14 }
 0x1fe   :  { %v339_v15 = vpop.f32.mrf.mxu1 }
 0x200   :  { %v560_v16 = vpop.f32.mrf.mxu1 }
 0x286   :  { %v178_v17 = vpop.xlane.xlu0 %177 }
 0x287   :  { %v179_v18 = vsub.f32 %v174_v12, %v178_v17 }
 0x289   :  { %v180_v19 = vmul.f32 1.442695, %v179_v18 }
 0x28b   :  { %575 = vpow2.f32 %v180_v19 }
 0x298   :  { %v576_v20 = vpop.eup %575 }
 0x299   :  { %v182_v21 = vsel %vm175_vm6, %v576_v20, 0.0 }
 0x29a   :  { %183 = vadd.xlane.f32.xlu1 %v182_v21 }
 0x2ab   :  { %344 = vrot.lane.b32.xlu1 %v339_v15, %s586_s1 }
 0x323   :  { %v184_v22 = vpop.xlane.xlu1 %183 }
 0x324   :  { %577 = vrcp.f32 %v184_v22 }
 0x327   :  { %v345_v24 = vpop.permute.xlu1 %344 }
 0x331   :  { %v578_v23 = vpop.eup %577 }
 0x332   :  { %v186_v25 = vmul.f32 %v578_v23, %v576_v20 }
 0x334   :  { %554 = vmatmul.mubr.msk.f32.vlgmr.msra.gmra.mxu0 %vm189_vm7, %v186_v25 }
 0x335   :  { %562 = vmatpush3.xpose.msk.msra.mxu0 %vm99_vm3, %v345_v24  ;;  %563 = vmatprep.mubr.msk.f32.mxu0 %vm584_vm2, %v583_v0 }
 0x338   :  { %564 = vmatmul.mubr.msk.f32.vlgmr.msra.gmra.mxu0 %vm99_vm3, %v339_v15 }
 0x3f4   :  { %v262_v26 = vpop.f32.mrf.mxu0 }
 0x3f5   :  { %267 = vst.msk [vmem:[%s649_s2] sm:$0x3f] %vm266_vm8, %v262_v26 }
 0x3f6   :  { %v555_v27 = vpop.f32.mrf.mxu0 }
 0x3f8   :  { %v416_v28 = vpop.f32.mrf.mxu0 }
 0x3f9   :  { %v420_v29 = vsel %vm16_vm5, -inf, %v416_v28 }
 0x3fa   :  { %v565_v30 = vpop.f32.mrf.mxu0  ;;  %v421_v31 = vsel %vm175_vm6, %v420_v29, -inf }
 0x3fb   :  { %422 = vmax.xlane.f32.xlu1 %v421_v31 }
 0x484   :  { %v423_v32 = vpop.xlane.xlu1 %422 }
 0x485   :  { %v424_v33 = vsub.f32 %v420_v29, %v423_v32 }
 0x487   :  { %v425_v34 = vmul.f32 1.442695, %v424_v33 }
 0x489   :  { %579 = vpow2.f32 %v425_v34 }
 0x496   :  { %v580_v35 = vpop.eup %579 }
 0x497   :  { %v427_v36 = vsel %vm175_vm6, %v580_v35, 0.0 }
 0x498   :  { %428 = vadd.xlane.f32.xlu0 %v427_v36 }
 0x4ae   :  { %432 = vrot.lane.b32.xlu0 %v339_v15, %s585_s13 }
 0x521   :  { %v429_v37 = vpop.xlane.xlu0 %428 }
 0x522   :  { %581 = vrcp.f32 %v429_v37 }
 0x525   :  { %v433_v38 = vpop.permute.xlu0 %432 }
 0x526   :  { %567 = vmatpush3.msk.msra.mxu1 %vm193_vm4, %v433_v38 }
 0x52f   :  { %v582_v39 = vpop.eup %581 }
 0x530   :  { %v431_v40 = vmul.f32 %v582_v39, %v580_v35 }
 0x532   :  { %569 = vmatmul.mubr.msk.f32.vlgmr.msra.gmra.mxu1 %vm189_vm7, %v431_v40 }
 0x5f2   :  { %v505_v41 = vpop.f32.mrf.mxu1 }
 0x5f3   :  { %528 = vst.msk [vmem:[%s649_s2 + $0x8] sm:$0x3f] %vm266_vm8, %v505_v41 }
 0x5f4   :  { %v570_v42 = vpop.f32.mrf.mxu1 }

</bundles_post_ra>
